<compile_context>
chip_gen: v6e
topology: v6e:2x2x1
jax: 0.10.0
libtpu: 0.0.40
codegen_flags: <defaults>
</compile_context>

<pallas_src>
import functools

import jax
import jax.numpy as jnp
from jax import lax
from jax.experimental import pallas as pl
from jax.experimental.pallas import tpu as pltpu

EPS = 1e-5

_MIN_STEPS = 8            # >= 4 grid steps per TensorCore on v7x (2 TCs share the grid)
_BLOCK_FLOOR = 1 << 20    # don't shrink blocks below ~1 MiB just to chase step count


def _chip_vmem_capacity():
    try:
        return int(pltpu.get_tpu_info().vmem_capacity_bytes)
    except Exception:
        return 64 << 20   # conservative: v7x per-TensorCore VMEM


def _target_block_bytes():
    cap = _chip_vmem_capacity()
    # v5e/v6e (128 MiB VMEM): ~6 MiB blocks; v7x (64 MiB): ~3 MiB blocks.
    return (6 << 20) if cap >= (96 << 20) else (3 << 20)


def _crossnorm_kernel(x_ref, stats_ref, o_ref, *, row_tile, stats_resident):
    """One tile of rows: instance-normalize each row, then rescale/shift.

    x_ref:     (row_tile, HW)  feature rows (spatial on the lane axis)
    stats_ref: (row_tile, 2) or resident (NC, 2); [:, 0] = target mean, [:, 1] = target std
    o_ref:     (row_tile, HW)
    """
    if stats_resident:
        r0 = pl.multiple_of(pl.program_id(0) * row_tile, row_tile)
        tmean = stats_ref[pl.ds(r0, row_tile), 0:1]
        tstd = stats_ref[pl.ds(r0, row_tile), 1:2]
    else:
        tmean = stats_ref[:, 0:1]
        tstd = stats_ref[:, 1:2]

    x = x_ref[...]
    xf = x.astype(jnp.float32)
    hw = xf.shape[-1]

    # Single-pass (sum, sum-of-squares) variance; clamp at 0 against cancellation.
    s1 = jnp.sum(xf, axis=-1, keepdims=True)
    s2 = jnp.sum(xf * xf, axis=-1, keepdims=True)
    mean = s1 * jnp.float32(1.0 / hw)
    # torch.var (calc_ins_mean_std) uses the unbiased estimator; HW == 1 diverges
    # (torch yields NaN, we return var = 0) -- acceptable degenerate-case difference.
    denom = jnp.float32(1.0 / max(hw - 1, 1))
    var = jnp.maximum(s2 - s1 * mean, 0.0) * denom

    # out = (x - mean) / std * tstd + tmean  ==  x * scale + shift
    scale = lax.rsqrt(var + EPS) * tstd          # (row_tile, 1)
    shift = tmean - mean * scale                 # (row_tile, 1)

    if x.dtype == jnp.float32:
        o_ref[...] = (xf * scale + shift).astype(o_ref.dtype)
    else:
        # Keep the full-width elementwise pass in the native dtype (bf16 VALUs on v6e/v7x,
        # and one fewer full-block f32 temporary on v7x's 64 MiB VMEM).
        o_ref[...] = (x * scale.astype(x.dtype) + shift.astype(x.dtype)).astype(o_ref.dtype)


def _pick_row_tile(nc, hw, itemsize):
    """Pick a sublane-aligned divisor of nc: blocks as large as possible (chip-aware cap)
    subject to having enough grid steps for the software pipeline, preferring an even
    step count so both v7x TensorCores get equal work."""
    pack = 8 * max(1, 4 // itemsize)             # f32 -> 8 rows, bf16 -> 16, int8 -> 32
    if nc <= pack or nc % pack != 0:
        return nc                                # full-array block: always a legal shape
    row_bytes = hw * itemsize
    target = _target_block_bytes()
    cands = [r for r in range(pack, nc + 1, pack) if nc % r == 0]
    fitting = [r for r in cands if r * row_bytes <= target]
    if not fitting:
        return pack                              # even the minimal aligned tile exceeds target

    def best(pool):
        even = [r for r in pool if (nc // r) % 2 == 0]   # even grid: both v7x TCs stay busy
        return max(even) if even else max(pool)

    # Tier 1/1.5: enough steps for a real pipeline AND blocks above the floor.
    for min_steps in (_MIN_STEPS, 4):
        t = [r for r in fitting if nc // r >= min_steps and r * row_bytes >= _BLOCK_FLOOR]
        if t:
            return best(t)
    # Small arrays: keep blocks big, still ask for >= 2 steps if possible.
    t2 = [r for r in fitting if nc // r >= 2]
    if t2:
        return best(t2)
    return max(fitting)


def _vmem_limit_bytes(row_tile, hw, nc, itemsize, stats_resident):
    """Scoped-VMEM budget: double-buffered in/out blocks + lane-padded stats + f32 temps."""
    cap = _chip_vmem_capacity()
    block = row_tile * hw
    need = 2 * 2 * block * itemsize              # double-buffered x + out blocks
    stats_rows = nc if stats_resident else row_tile
    need += 2 * stats_rows * 128 * 4             # stats tile is lane-padded to 128 per row
    need += 3 * block * 4                        # in-kernel f32 temporaries
    need += 8 << 20                              # compiler scratch / headroom
    limit = max(need, 32 << 20)
    return int(min(limit, max(32 << 20, cap - (8 << 20))))


@functools.partial(jax.jit, static_argnames=("row_tile",))
def crossnorm_pallas(x, transfer_mean, transfer_std, *, row_tile=None):
    """x: (N, C, H, W).  transfer_mean / transfer_std: scalar or broadcastable to (N, C)."""
    N, C, H, W = x.shape
    NC, HW = N * C, H * W
    itemsize = jnp.dtype(x.dtype).itemsize

    if row_tile is None:
        row_tile = _pick_row_tile(NC, HW, itemsize)
    assert NC % row_tile == 0, "row_tile must divide N*C"
    pack = 8 * max(1, 4 // itemsize)
    assert row_tile == NC or row_tile % pack == 0, (
        "row_tile must be sublane-aligned for dtype (8 f32 / 16 bf16 / 32 int8)")

    grid_steps = NC // row_tile
    # Keep the tiny stats array resident in VMEM (constant index_map) when it is small:
    # removes a per-step DMA descriptor + sub-128-lane masked load from the steady state.
    stats_resident = grid_steps > 1 and NC * 128 * 4 * 2 <= (2 << 20)

    x2d = x.reshape(NC, HW)
    tmean = jnp.broadcast_to(jnp.asarray(transfer_mean, jnp.float32), (N, C)).reshape(NC)
    tstd = jnp.broadcast_to(jnp.asarray(transfer_std, jnp.float32), (N, C)).reshape(NC)
    stats = jnp.stack([tmean, tstd], axis=-1)    # (NC, 2)

    if stats_resident:
        stats_spec = pl.BlockSpec((NC, 2), lambda i: (0, 0))
    else:
        stats_spec = pl.BlockSpec((row_tile, 2), lambda i: (i, 0))

    kernel = functools.partial(
        _crossnorm_kernel, row_tile=row_tile, stats_resident=stats_resident)

    cost = pl.CostEstimate(
        flops=int(5 * NC * HW),
        transcendentals=int(NC),
        bytes_accessed=int(2 * NC * HW * itemsize + 2 * NC * 2 * 4),
    )

    out2d = pl.pallas_call(
        kernel,
        out_shape=jax.ShapeDtypeStruct((NC, HW), x.dtype),
        grid_spec=pltpu.PrefetchScalarGridSpec(
            num_scalar_prefetch=0,
            grid=(grid_steps,),
            in_specs=[
                pl.BlockSpec((row_tile, HW), lambda i: (i, 0)),
                stats_spec,
            ],
            out_specs=pl.BlockSpec((row_tile, HW), lambda i: (i, 0)),
        ),
        compiler_params=pltpu.CompilerParams(
            dimension_semantics=("parallel",),
            vmem_limit_bytes=_vmem_limit_bytes(row_tile, HW, NC, itemsize, stats_resident),
        ),
        cost_estimate=cost,
    )(x2d, stats)
    return out2d.reshape(N, C, H, W)


class CrossNormList:
    """JAX/Pallas port of CrossNorm_list.

    mean_list / std_list initialized deterministically to 0.0 / 1.0 (as in the
    PyTorch __init__); update_ins_mean_std replaces them with per-(N, C) stats.
    """

    def __init__(self, nb_target):
        self.mean_list = [jnp.float32(0.0) for _ in range(nb_target)]
        self.std_list = [jnp.float32(1.0) for _ in range(nb_target)]

    def __call__(self, x, current_id, transfer_id):
        return crossnorm_pallas(x, self.mean_list[transfer_id], self.std_list[transfer_id])

    def update_ins_mean_std(self, x, current_id):
        N, C, H, W = x.shape
        x2d = x.reshape(N, C, H * W).astype(jnp.float32)
        mean = jnp.mean(x2d, axis=2)
        var = jnp.var(x2d, axis=2, ddof=1) + EPS
        self.mean_list[current_id] = mean          # (N, C)
        self.std_list[current_id] = jnp.sqrt(var)  # (N, C)


def _reference(x, tmean, tstd):
    N, C, H, W = x.shape
    x2d = x.reshape(N, C, H * W).astype(jnp.float32)
    mean = jnp.mean(x2d, axis=2, keepdims=True)
    var = jnp.var(x2d, axis=2, keepdims=True, ddof=1)
    std = jnp.sqrt(var + EPS)
    normalized = (x2d - mean) / std
    tmean_b = jnp.broadcast_to(jnp.asarray(tmean, jnp.float32), (N, C)).reshape(N, C, 1)
    tstd_b = jnp.broadcast_to(jnp.asarray(tstd, jnp.float32), (N, C)).reshape(N, C, 1)
    return (normalized * tstd_b + tmean_b).reshape(N, C, H, W).astype(x.dtype)


if __name__ == "__main__":
    key = jax.random.PRNGKey(0)
    N, C, H, W = 2, 4, 16, 16
    nb_target = 3

    k1, k2, k3, k4 = jax.random.split(key, 4)
    x = jax.random.normal(k1, (N, C, H, W), dtype=jnp.float32) * 2.0 + 0.5
    x_other = jax.random.normal(k2, (N, C, H, W), dtype=jnp.float32) * 0.7 - 1.3

    cn = CrossNormList(nb_target)
    # Populate target-id 1 statistics (as update_ins_mean_std would at train time).
    cn.update_ins_mean_std(x_other, current_id=1)

    # Case A: transfer to default (mean=0, std=1)  -> plain instance normalization.
    out_a = cn(x, current_id=0, transfer_id=0)
    jax.block_until_ready(out_a)
    ref_a = _reference(x, cn.mean_list[0], cn.std_list[0])

    # Case B: transfer to stored stats of target 1.
    out_b = cn(x, current_id=0, transfer_id=1)
    jax.block_until_ready(out_b)
    ref_b = _reference(x, cn.mean_list[1], cn.std_list[1])

    # Case C: a larger feature map exercising the multi-step tiled path (grid > 1)
    # and the VMEM-resident stats block.
    Nl, Cl, Hl, Wl = 2, 64, 32, 32
    x_large = jax.random.normal(k3, (Nl, Cl, Hl, Wl), dtype=jnp.float32) * 1.5 - 0.25
    out_c = crossnorm_pallas(x_large, jnp.float32(0.3), jnp.float32(1.7))
    jax.block_until_ready(out_c)
    ref_c = _reference(x_large, jnp.float32(0.3), jnp.float32(1.7))

    # Case D: bf16 input exercising the native-dtype elementwise path.
    x_bf16 = (jax.random.normal(k4, (2, 16, 16, 16), dtype=jnp.float32) * 1.2 + 0.3
              ).astype(jnp.bfloat16)
    out_d = crossnorm_pallas(x_bf16, jnp.float32(-0.2), jnp.float32(0.9))
    jax.block_until_ready(out_d)
    ref_d = _reference(x_bf16, jnp.float32(-0.2), jnp.float32(0.9))

    assert jnp.allclose(out_a, ref_a, atol=1e-4, rtol=1e-4), "mismatch vs reference (case A)"
    assert jnp.allclose(out_b, ref_b, atol=1e-4, rtol=1e-4), "mismatch vs reference (case B)"
    assert jnp.allclose(out_c, ref_c, atol=1e-4, rtol=1e-4), "mismatch vs reference (case C)"
    assert jnp.allclose(out_d.astype(jnp.float32), ref_d.astype(jnp.float32),
                        atol=1.5e-1, rtol=5e-2), "mismatch vs reference (case D, bf16)"

    print("KERNEL_OK")
</pallas_src>

<mosaic_0001>
module attributes {stable_mosaic.version = 11 : i64} {
  func.func @_crossnorm_kernel(%arg0: i32, %arg1: memref<8x256xf32, #tpu.memory_space<vmem>>, %arg2: memref<8x2xf32, #tpu.memory_space<vmem>>, %arg3: memref<8x256xf32, #tpu.memory_space<vmem>>) attributes {dimension_semantics = [#tpu.dimension_semantics<parallel>], iteration_bounds = array<i64: 1>, scalar_prefetch = 0 : i64, scratch_operands = 0 : i64, tpu.core_type = #tpu.core_type<tc>, window_params = [{transform_indices = @transform_0, window_bounds = array<i64: 8, 256>}, {transform_indices = @transform_1, window_bounds = array<i64: 8, 2>}, {transform_indices = @transform_2, window_bounds = array<i64: 8, 256>}]} {
    %c0 = arith.constant 0 : index
    %c0_0 = arith.constant 0 : index
    %0 = vector.load %arg2[%c0, %c0_0] : memref<8x2xf32, #tpu.memory_space<vmem>>, vector<8x1xf32>
    %c0_1 = arith.constant 0 : index
    %c1 = arith.constant 1 : index
    %1 = vector.load %arg2[%c0_1, %c1] : memref<8x2xf32, #tpu.memory_space<vmem>>, vector<8x1xf32>
    %c0_2 = arith.constant 0 : index
    %c0_3 = arith.constant 0 : index
    %2 = vector.load %arg1[%c0_2, %c0_3] : memref<8x256xf32, #tpu.memory_space<vmem>>, vector<8x256xf32>
    %cst = arith.constant dense<0.000000e+00> : vector<8xf32>
    %3 = vector.multi_reduction <add>, %2, %cst [1] : vector<8x256xf32> to vector<8xf32>
    %4 = vector.shape_cast %3 : vector<8xf32> to vector<8x1xf32>
    %5 = arith.mulf %2, %2 : vector<8x256xf32>
    %cst_4 = arith.constant dense<0.000000e+00> : vector<8xf32>
    %6 = vector.multi_reduction <add>, %5, %cst_4 [1] : vector<8x256xf32> to vector<8xf32>
    %7 = vector.shape_cast %6 : vector<8xf32> to vector<8x1xf32>
    %cst_5 = arith.constant 3.906250e-03 : f32
    %8 = vector.broadcast %cst_5 : f32 to vector<8x1xf32>
    %9 = arith.mulf %4, %8 : vector<8x1xf32>
    %10 = arith.mulf %4, %9 : vector<8x1xf32>
    %11 = arith.subf %7, %10 : vector<8x1xf32>
    %cst_6 = arith.constant 0.000000e+00 : f32
    %12 = vector.broadcast %cst_6 : f32 to vector<8x1xf32>
    %13 = arith.maximumf %11, %12 : vector<8x1xf32>
    %cst_7 = arith.constant 0.00392156886 : f32
    %14 = vector.broadcast %cst_7 : f32 to vector<8x1xf32>
    %15 = arith.mulf %13, %14 : vector<8x1xf32>
    %cst_8 = arith.constant 9.99999974E-6 : f32
    %16 = vector.broadcast %cst_8 : f32 to vector<8x1xf32>
    %17 = arith.addf %15, %16 : vector<8x1xf32>
    %18 = math.rsqrt %17 : vector<8x1xf32>
    %19 = arith.mulf %18, %1 : vector<8x1xf32>
    %20 = arith.mulf %9, %19 : vector<8x1xf32>
    %21 = arith.subf %0, %20 : vector<8x1xf32>
    %22 = vector.broadcast %19 : vector<8x1xf32> to vector<8x256xf32>
    %23 = arith.mulf %2, %22 : vector<8x256xf32>
    %24 = vector.broadcast %21 : vector<8x1xf32> to vector<8x256xf32>
    %25 = arith.addf %23, %24 : vector<8x256xf32>
    %c0_9 = arith.constant 0 : index
    %c0_10 = arith.constant 0 : index
    %26 = vector.load %arg3[%c0_9, %c0_10] : memref<8x256xf32, #tpu.memory_space<vmem>>, vector<8x256xf32>
    tpu.vector_store %arg3[%c0_9, %c0_10], %25 {strides = array<i32>} : memref<8x256xf32, #tpu.memory_space<vmem>>, vector<8x256xf32>,
    return
  }
  func.func @transform_0(%arg0: i32) -> (i32, i32) {
    %c0_i32 = arith.constant 0 : i32
    %c0_i32_0 = arith.constant 0 : i32
    return %arg0, %c0_i32 : i32, i32
  }
  func.func @transform_1(%arg0: i32) -> (i32, i32) {
    %c0_i32 = arith.constant 0 : i32
    %c0_i32_0 = arith.constant 0 : i32
    return %arg0, %c0_i32 : i32, i32
  }
  func.func @transform_2(%arg0: i32) -> (i32, i32) {
    %c0_i32 = arith.constant 0 : i32
    %c0_i32_0 = arith.constant 0 : i32
    return %arg0, %c0_i32 : i32, i32
  }
}

</mosaic_0001>

<bundles_post_ra>
// kernel: crossnorm_pallas.1
= control target key start
LH: loop header
LB: loop body
LE: loop exit
PB: predicated region body
PF: predicated region fallthrough
CT: control target
= control target key end

     0   :  { %v63_v6 = vmov 1   ;;  %v64_v15 = vmov 0   ;;  %s65_s14 = smov 127   ;;  %s96_s0 = inlined_call_operand.vmem [shape: f32[8,256], index: 0, kind: input, shape index: {}]   ;;  %s97_s1 = inlined_call_operand.vmem [shape: f32[8,2], index: 1, kind: input, shape index: {}]   ;;  %s98_s2 = inlined_call_operand.vmem [shape: f32[8,256], index: 2, kind: output, shape index: {}]  }
   0x1   :  { %v12_v0 = vld [vmem:[%s96_s0] sm:$0xff]  ;;  %v13_v1 = vld [vmem:[%s96_s0 + $0x8] sm:$0xff]  ;;  %59 = vset.pattern.permute.xlu1 %v63_v6  ;;  %60 = vset.pattern.permute.xlu0 %v64_v15 }
   0x2   :  { %v14_v2 = vadd.f32 %v13_v1, %v12_v0  ;;  %v17_v3 = vmul.f32 %v12_v0, %v12_v0  ;;  %v18_v4 = vmul.f32 %v13_v1, %v13_v1  ;;  %v11_v16 = vld [vmem:[%s97_s1] sm:$0xff] }
   0x4   :  { %15 = vadd.xlane.f32.xlu0 %v14_v2  ;;  %v19_v5 = vadd.f32 %v18_v4, %v17_v3 }
   0x8   :  { %20 = vadd.xlane.f32.xlu0 %v19_v5 }
  0x8d   :  { %v16_v7 = vpop.xlane.xlu0 %15 }
  0x8e   :  { %v22_v8 = vmul.f32 0.00390625, %v16_v7 }
  0x90   :  { %v23_v9 = vmul.f32 %v22_v8, %v16_v7 }
  0x91   :  { %v21_v10 = vpop.xlane.xlu0 %20 }
  0x92   :  { %v24_v11 = vsub.f32 %v21_v10, %v23_v9 }
  0x94   :  { %v25_v12 = vmax.f32 %v24_v11, 0.0 }
  0x96   :  { %v26_v13 = vmul.f32 0.003921569, %v25_v12 }
  0x98   :  { %v27_v14 = vadd.f32 1e-05, %v26_v13 }
  0x9a   :  { %61 = vrsqrt.f32 %v27_v14 }
  0xa7   :  { %v62_v17 = vpop.eup %61 }
  0xa8   :  { %v29_v18 = vmul.f32 %v62_v17, %v11_v16 }
  0xaa   :  { %v30_v19 = vmul.f32 %v29_v18, %v22_v8 }
  0xac   :  { %32 = vrot.lane.b32.xlu1 %v30_v19, %s65_s14 }
  0xb0   :  { %38 = vperm.xlu1 %59, %v29_v18  }
 0x11e   :  { %v33_v20 = vpop.permute.xlu1 %32 }
 0x11f   :  { %v35_v21 = vsub.f32 %v11_v16, %v33_v20 }
 0x121   :  { %45 = vperm.xlu0 %60, %v35_v21  }
 0x12b   :  { %v39_v22 = vpop.permute.xlu1 %38 }
 0x12c   :  { %v41_v23 = vmul.f32 %v39_v22, %v12_v0  ;;  %v42_v24 = vmul.f32 %v39_v22, %v13_v1 }
 0x19c   :  { %v46_v25 = vpop.permute.xlu0 %45 }
 0x19d   :  { %v48_v26 = vadd.f32 %v46_v25, %v41_v23  ;;  %v49_v27 = vadd.f32 %v46_v25, %v42_v24 }
 0x19f   :  { %50 = vst [vmem:[%s98_s2] sm:$0xff] %v48_v26  ;;  %51 = vst [vmem:[%s98_s2 + $0x8] sm:$0xff] %v49_v27 }

</bundles_post_ra>
